<compile_context>
chip_gen: v7x
topology: tpu7x:2x2x1
jax: 0.10.0
libtpu: 0.0.40
codegen_flags: <defaults>
</compile_context>

<pallas_src>
import jax
import jax.numpy as jnp
from jax.experimental import pallas as pl
from jax.experimental.pallas import tpu as pltpu


# ----------------------------------------------------------------------------
# Helpers
# ----------------------------------------------------------------------------
def _round_up(x, m):
    return (x + m - 1) // m * m


def _divisor_tile(n, max_tile):
    """Largest t <= max_tile that divides n (grid covers n exactly).
    TODO(synk): for awkward (prime-ish) n switch to a pl.cdiv grid with a
    masked last tile instead of letting the tile collapse toward 1."""
    t = int(max(1, min(max_tile, n)))
    while n % t:
        t -= 1
    return t


def _vmem_limit_bytes():
    """Per-generation VMEM budget: ~96 MiB on v5e/v6e (128 MiB physical),
    ~48 MiB on v7x (64 MiB per TensorCore)."""
    try:
        cap = int(pltpu.get_tpu_info().vmem_capacity_bytes)
    except Exception:
        cap = 64 * 1024 * 1024          # conservative fallback (v7x per-core VMEM)
    return min((cap * 3) // 4, 100 * 1024 * 1024)


_BUFFERED1_OK = None


def _single_buffer_supported():
    """Probe once whether pipeline_mode=pl.Buffered(1) lowers on this backend,
    so the resident conv weights can be single-buffered.  Falls back cleanly to
    the default double-buffered pipeline if not."""
    global _BUFFERED1_OK
    if _BUFFERED1_OK is None:
        try:
            def _copy(x_ref, o_ref):
                o_ref[...] = x_ref[...]
            with jax.ensure_compile_time_eval():
                fn = pl.pallas_call(
                    _copy,
                    out_shape=jax.ShapeDtypeStruct((16, 128), jnp.float32),
                    grid=(2,),
                    in_specs=[pl.BlockSpec((8, 128), lambda i: (0, 0),
                                           pipeline_mode=pl.Buffered(1))],
                    out_specs=pl.BlockSpec((8, 128), lambda i: (i, 0)),
                )
                jax.block_until_ready(fn(jnp.ones((8, 128), jnp.float32)))
            _BUFFERED1_OK = True
        except Exception:
            _BUFFERED1_OK = False
    return _BUFFERED1_OK


# ----------------------------------------------------------------------------
# Kernels
# ----------------------------------------------------------------------------
def _conv3x3_s2_kernel(xm_ref, xh_ref, w_ref, b_ref, o_ref):
    """3x3 / stride-2 conv on a row tile as 6 accumulated 2-D MXU matmuls.

    xm_ref: (1, tho, 2, Wo+1, 2*Cp)  phase-packed padded rows [r0, r0+tho)
    xh_ref: (1, 1,   2, Wo+1, 2*Cp)  halo: phase-packed padded row r0+tho
    w_ref : (3, 3*Cp, Cp)            per-ki weight slabs [kj0|kj1|kj2] x cin
    b_ref : (1, Cp)                  bias, f32
    o_ref : (1, tho, Wo, Cp)

    Phase (row parity a, col parity b) of the padded input lives at
    [..., a, :, b*Cp:(b+1)*Cp].  For kernel row ki, the row slab's first Wo
    column blocks are already taps kj=0,1 lane-packed side by side -> one
    K=2*Cp matmul; tap kj=2 is the b=0 half shifted by one column block -> one
    K=Cp matmul.  All dots accumulate into a single (tho*Wo, Cp) f32 buffer so
    the MXU M dimension is tho*Wo, not Wo.
    """
    _, tho, wo, cp = o_ref.shape
    m = tho * wo

    acc = jnp.zeros((m, cp), jnp.float32)
    for ki in range(3):                                      # statically unrolled
        if ki < 2:
            slab = xm_ref[0, :, ki, :, :]                    # (tho, Wo+1, 2Cp)
        else:
            # ki == 2: padded rows 2h+2 = a=0 plane of rows [1, tho] (+ halo).
            halo = xh_ref[0, :, 0, :, :]                     # (1, Wo+1, 2Cp)
            slab = halo if tho == 1 else jnp.concatenate(
                [xm_ref[0, 1:, 0, :, :], halo], axis=0)
        # taps kj = 0, 1: already lane-packed [b=0 | b=1] in the slab.
        lhs01 = slab[:, :wo, :].reshape(m, 2 * cp)
        acc = acc + jnp.dot(lhs01, w_ref[ki, :2 * cp, :],
                            preferred_element_type=jnp.float32)
        # tap kj = 2: b=0 half of the next column block.
        lhs2 = slab[:, 1:wo + 1, :cp].reshape(m, cp)
        acc = acc + jnp.dot(lhs2, w_ref[ki, 2 * cp:, :],
                            preferred_element_type=jnp.float32)
    acc = acc + b_ref[...]
    o_ref[0] = acc.reshape(tho, wo, cp).astype(o_ref.dtype)


def _avgpool2x2_kernel(x_ref, o_ref):
    """2x2 / stride-2 average pool on a row tile (pure VPU adds, no shuffles).

    x_ref: (1, th, 2, Wo, 2*C)   free-reshaped NHWC rows [2*r0, 2*r0 + 2*th)
    o_ref: (1, th, Wo, C)
    """
    c = o_ref.shape[-1]
    x = x_ref[0]
    s = (x[:, 0, :, :c].astype(jnp.float32) + x[:, 0, :, c:].astype(jnp.float32) +
         x[:, 1, :, :c].astype(jnp.float32) + x[:, 1, :, c:].astype(jnp.float32))
    o_ref[0] = (s * 0.25).astype(o_ref.dtype)


# ----------------------------------------------------------------------------
# Wrapper
# ----------------------------------------------------------------------------
def downsample(x_nchw, *, with_conv, conv_w=None, conv_b=None):
    """Forward pass of Downsample.  x_nchw: (N, C, H, W) with even H, W."""
    n, c, h, w = x_nchw.shape
    assert h % 2 == 0 and w % 2 == 0, "Downsample assumes even spatial dims"
    ho, wo = h // 2, w // 2
    itemsize = x_nchw.dtype.itemsize
    vmem_limit = _vmem_limit_bytes()

    # NCHW -> NHWC (C on the lane axis).
    # TODO(synk): fold the NCHW<->NHWC transposes (and the conv-path pad) into
    # the kernels, or keep the surrounding model NHWC, to drop the remaining
    # glue HBM passes.
    x = jnp.transpose(x_nchw, (0, 2, 3, 1))

    if with_conv:
        cp = _round_up(c, 128)   # lane-dense Cin/Cout: full MXU lanes, unmasked stores
        op_dtype = x.dtype       # MXU operands stay in the module's dtype (f32-safe)

        # F.pad(..., (0,1,0,1)): +1 zero row/col on the bottom/right, plus one
        # extra zero row/col (never used by any tap) so H+2 / W+2 are even;
        # pad C -> Cp.  The 2x2 phase split below is a free reshape:
        # phase (a, b) lives at xs[:, :, a, :, b*Cp:(b+1)*Cp].
        xp = jnp.pad(x, ((0, 0), (0, 2), (0, 2), (0, cp - c)))
        xs = xp.reshape(n, ho + 1, 2, wo + 1, 2 * cp)

        # Conv weights OIHW -> per-kernel-row slabs: w_all[ki] has rows
        # [(kj=0, cin); (kj=1, cin); (kj=2, cin)] and cols cout, shape (3*Cp, Cp).
        w_hwio = jnp.transpose(conv_w, (2, 3, 1, 0))             # (3, 3, Cin, Cout)
        w_hwio = jnp.pad(w_hwio, ((0, 0), (0, 0), (0, cp - c), (0, cp - c)))
        w01 = w_hwio[:, :2].reshape(3, 2 * cp, cp)
        w2 = w_hwio[:, 2]
        w_all = jnp.concatenate([w01, w2], axis=1).astype(op_dtype)   # (3, 3Cp, Cp)
        b2 = jnp.pad(conv_b, (0, cp - c)).astype(jnp.float32).reshape(1, cp)

        single_buf = _single_buffer_supported()
        n_wbuf = 1 if single_buf else 2

        # Row-tile size: VMEM budget now includes the in-kernel temporaries
        # (ki=2 shifted slab, im2col slabs, f32 accumulator), not just the
        # pipelined blocks; tho is capped at 32 (M = 32*Wo keeps the MXU full).
        in_row = 2 * (wo + 1) * 2 * cp * itemsize                 # main block, per row
        out_row = wo * cp * itemsize
        tmp_row = ((wo + 1) * 2 * cp * itemsize                   # ki=2 shifted slab
                   + 9 * wo * cp * itemsize                       # im2col slabs (3 ki live)
                   + wo * cp * 4)                                 # f32 accumulator
        per_row = 2 * in_row + 2 * out_row + tmp_row
        fixed = (n_wbuf * (9 * cp * cp + cp) * itemsize           # resident weights+bias
                 + 2 * in_row)                                    # 1-row halo block
        budget = max(vmem_limit // 2 - fixed, per_row)
        tho = _divisor_tile(ho, min(budget // per_row, 32))
        if n * (ho // tho) < 2 and ho >= 2:   # keep both v7x TensorCores busy
            tho = _divisor_tile(ho, ho // 2)

        const_kw = dict(pipeline_mode=pl.Buffered(1)) if single_buf else {}
        out = pl.pallas_call(
            _conv3x3_s2_kernel,
            out_shape=jax.ShapeDtypeStruct((n, ho, wo, cp), x.dtype),
            grid=(n, ho // tho),
            in_specs=[
                # main rows [r*tho, r*tho+tho) of the tile ...
                pl.BlockSpec((1, tho, 2, wo + 1, 2 * cp),
                             lambda i, r: (i, r, 0, 0, 0)),
                # ... plus a 1-row halo block of the SAME array at row
                # r*tho + tho (<= Ho, always in range thanks to the pad).
                pl.BlockSpec((1, 1, 2, wo + 1, 2 * cp),
                             lambda i, r: (i, r * tho + tho, 0, 0, 0)),
                # constant-index residents: single-buffered when supported.
                pl.BlockSpec((3, 3 * cp, cp), lambda i, r: (0, 0, 0), **const_kw),
                pl.BlockSpec((1, cp), lambda i, r: (0, 0), **const_kw),
            ],
            out_specs=pl.BlockSpec((1, tho, wo, cp), lambda i, r: (i, r, 0, 0)),
            compiler_params=pltpu.CompilerParams(
                dimension_semantics=("parallel", "parallel"),
                vmem_limit_bytes=vmem_limit),
        )(xs, xs, w_all, b2)
        out = out[..., :c]
    else:
        # Pure-bandwidth path: no pad, no space-to-depth copy -- just a free
        # reshape of NHWC; the kernel reads each element exactly once.
        # (C is deliberately NOT padded to 128 here: padding would inflate HBM
        #  traffic of a memory-bound op; production C is already a multiple of 128.)
        xs = x.reshape(n, ho, 2, wo, 2 * c)
        in_row = 2 * wo * 2 * c * itemsize
        out_row = wo * c * itemsize
        tmp_row = 5 * wo * c * 4                                  # f32 partial sums
        per_row = 2 * in_row + 2 * out_row + tmp_row
        th = _divisor_tile(ho, min(max((vmem_limit // 2) // per_row, 1), 512))
        if n * (ho // th) < 2 and ho >= 2:    # keep both v7x TensorCores busy
            th = _divisor_tile(ho, ho // 2)
        out = pl.pallas_call(
            _avgpool2x2_kernel,
            out_shape=jax.ShapeDtypeStruct((n, ho, wo, c), x.dtype),
            grid=(n, ho // th),
            in_specs=[pl.BlockSpec((1, th, 2, wo, 2 * c),
                                   lambda i, r: (i, r, 0, 0, 0))],
            out_specs=pl.BlockSpec((1, th, wo, c), lambda i, r: (i, r, 0, 0)),
            compiler_params=pltpu.CompilerParams(
                dimension_semantics=("parallel", "parallel"),
                vmem_limit_bytes=vmem_limit),
        )(xs)

    return jnp.transpose(out, (0, 3, 1, 2))   # NHWC -> NCHW


# ----------------------------------------------------------------------------
# References (pure JAX, NCHW) for validation
# ----------------------------------------------------------------------------
def _ref_conv(x, w, b):
    y = jax.lax.conv_general_dilated(
        x, w, window_strides=(2, 2), padding=((0, 1), (0, 1)),
        dimension_numbers=("NCHW", "OIHW", "NCHW"))
    return y + b[None, :, None, None]


def _ref_avgpool(x):
    n, c, h, w = x.shape
    return x.reshape(n, c, h // 2, 2, w // 2, 2).mean(axis=(3, 5))


# ----------------------------------------------------------------------------
if __name__ == "__main__":
    key = jax.random.PRNGKey(0)
    k_x, k_w, k_b = jax.random.split(key, 3)

    N, C, H, W = 2, 4, 16, 16
    x = jax.random.normal(k_x, (N, C, H, W), dtype=jnp.float32)
    # Conv2d(C, C, kernel_size=3): weight OIHW, bias (C,)
    conv_w = 0.1 * jax.random.normal(k_w, (C, C, 3, 3), dtype=jnp.float32)
    conv_b = 0.1 * jax.random.normal(k_b, (C,), dtype=jnp.float32)

    # with_conv = True path (f32 operands, f32 accumulate; tolerance allows for
    # the TPU MXU's reduced-precision default on f32 matmuls).
    down_conv = jax.jit(lambda v: downsample(v, with_conv=True,
                                             conv_w=conv_w, conv_b=conv_b))
    y_conv = jax.block_until_ready(down_conv(x))
    y_conv_ref = _ref_conv(x, conv_w, conv_b)
    assert y_conv.shape == (N, C, H // 2, W // 2)
    assert jnp.allclose(y_conv, y_conv_ref, atol=2e-2, rtol=2e-2), \
        float(jnp.max(jnp.abs(y_conv - y_conv_ref)))

    # with_conv = False path (exact f32 averaging).
    down_pool = jax.jit(lambda v: downsample(v, with_conv=False))
    y_pool = jax.block_until_ready(down_pool(x))
    y_pool_ref = _ref_avgpool(x)
    assert y_pool.shape == (N, C, H // 2, W // 2)
    assert jnp.allclose(y_pool, y_pool_ref, atol=1e-5, rtol=1e-5)

    print("KERNEL_OK")
</pallas_src>

<mosaic_0001>
module attributes {stable_mosaic.version = 11 : i64} {
  func.func @_conv3x3_s2_kernel(%arg0: i32, %arg1: i32, %arg2: memref<1x8x2x9x256xf32, #tpu.memory_space<vmem>>, %arg3: memref<1x1x2x9x256xf32, #tpu.memory_space<vmem>>, %arg4: memref<3x384x128xf32, #tpu.memory_space<vmem>>, %arg5: memref<1x128xf32, #tpu.memory_space<vmem>>, %arg6: memref<1x8x8x128xf32, #tpu.memory_space<vmem>>) attributes {dimension_semantics = [#tpu.dimension_semantics<parallel>, #tpu.dimension_semantics<parallel>], iteration_bounds = array<i64: 2, 1>, scalar_prefetch = 0 : i64, scratch_operands = 0 : i64, tpu.core_type = #tpu.core_type<tc>, window_params = [{transform_indices = @transform_0, window_bounds = array<i64: 1, 8, 2, 9, 256>}, {transform_indices = @transform_1, window_bounds = array<i64: 1, 1, 2, 9, 256>}, {pipeline_mode = #tpu.pipeline_mode<synchronous>, transform_indices = @transform_2, window_bounds = array<i64: 3, 384, 128>}, {pipeline_mode = #tpu.pipeline_mode<synchronous>, transform_indices = @transform_3, window_bounds = array<i64: 1, 128>}, {transform_indices = @transform_4, window_bounds = array<i64: 1, 8, 8, 128>}]} {
    %cst = arith.constant 0.000000e+00 : f32
    %0 = vector.broadcast %cst : f32 to vector<64x128xf32>
    %c0 = arith.constant 0 : index
    %c0_0 = arith.constant 0 : index
    %c0_1 = arith.constant 0 : index
    %c0_2 = arith.constant 0 : index
    %c0_3 = arith.constant 0 : index
    %1 = vector.load %arg2[%c0, %c0_0, %c0_1, %c0_2, %c0_3] : memref<1x8x2x9x256xf32, #tpu.memory_space<vmem>>, vector<1x8x1x9x256xf32>
    %2 = vector.shape_cast %1 : vector<1x8x1x9x256xf32> to vector<8x9x256xf32>
    %3 = vector.extract_strided_slice %2 {offsets = [0, 0, 0], sizes = [8, 8, 256], strides = [1, 1, 1]} : vector<8x9x256xf32> to vector<8x8x256xf32>
    %4 = vector.shape_cast %3 : vector<8x8x256xf32> to vector<64x256xf32>
    %c0_4 = arith.constant 0 : index
    %c0_5 = arith.constant 0 : index
    %c0_6 = arith.constant 0 : index
    %5 = vector.load %arg4[%c0_4, %c0_5, %c0_6] : memref<3x384x128xf32, #tpu.memory_space<vmem>>, vector<1x256x128xf32>
    %6 = vector.shape_cast %5 : vector<1x256x128xf32> to vector<256x128xf32>
    %cst_7 = arith.constant dense<0.000000e+00> : vector<64x128xf32>
    %7 = tpu.matmul %4, %6, %cst_7 {dimension_numbers = #tpu.dot_dimension_numbers<[1], [0], [0], [1], [0, 0, 1, 1], [], []>} : vector<64x256xf32>, vector<256x128xf32>, vector<64x128xf32> -> vector<64x128xf32>
    %8 = arith.addf %0, %7 : vector<64x128xf32>
    %9 = vector.extract_strided_slice %2 {offsets = [0, 1, 0], sizes = [8, 8, 128], strides = [1, 1, 1]} : vector<8x9x256xf32> to vector<8x8x128xf32>
    %10 = vector.shape_cast %9 : vector<8x8x128xf32> to vector<64x128xf32>
    %c0_8 = arith.constant 0 : index
    %c256 = arith.constant 256 : index
    %c0_9 = arith.constant 0 : index
    %11 = vector.load %arg4[%c0_8, %c256, %c0_9] : memref<3x384x128xf32, #tpu.memory_space<vmem>>, vector<1x128x128xf32>
    %12 = vector.shape_cast %11 : vector<1x128x128xf32> to vector<128x128xf32>
    %cst_10 = arith.constant dense<0.000000e+00> : vector<64x128xf32>
    %13 = tpu.matmul %10, %12, %cst_10 {dimension_numbers = #tpu.dot_dimension_numbers<[1], [0], [0], [1], [0, 0, 1, 1], [], []>} : vector<64x128xf32>, vector<128x128xf32>, vector<64x128xf32> -> vector<64x128xf32>
    %14 = arith.addf %8, %13 : vector<64x128xf32>
    %c0_11 = arith.constant 0 : index
    %c0_12 = arith.constant 0 : index
    %c1 = arith.constant 1 : index
    %c0_13 = arith.constant 0 : index
    %c0_14 = arith.constant 0 : index
    %15 = vector.load %arg2[%c0_11, %c0_12, %c1, %c0_13, %c0_14] : memref<1x8x2x9x256xf32, #tpu.memory_space<vmem>>, vector<1x8x1x9x256xf32>
    %16 = vector.shape_cast %15 : vector<1x8x1x9x256xf32> to vector<8x9x256xf32>
    %17 = vector.extract_strided_slice %16 {offsets = [0, 0, 0], sizes = [8, 8, 256], strides = [1, 1, 1]} : vector<8x9x256xf32> to vector<8x8x256xf32>
    %18 = vector.shape_cast %17 : vector<8x8x256xf32> to vector<64x256xf32>
    %c1_15 = arith.constant 1 : index
    %c0_16 = arith.constant 0 : index
    %c0_17 = arith.constant 0 : index
    %19 = vector.load %arg4[%c1_15, %c0_16, %c0_17] : memref<3x384x128xf32, #tpu.memory_space<vmem>>, vector<1x256x128xf32>
    %20 = vector.shape_cast %19 : vector<1x256x128xf32> to vector<256x128xf32>
    %cst_18 = arith.constant dense<0.000000e+00> : vector<64x128xf32>
    %21 = tpu.matmul %18, %20, %cst_18 {dimension_numbers = #tpu.dot_dimension_numbers<[1], [0], [0], [1], [0, 0, 1, 1], [], []>} : vector<64x256xf32>, vector<256x128xf32>, vector<64x128xf32> -> vector<64x128xf32>
    %22 = arith.addf %14, %21 : vector<64x128xf32>
    %23 = vector.extract_strided_slice %16 {offsets = [0, 1, 0], sizes = [8, 8, 128], strides = [1, 1, 1]} : vector<8x9x256xf32> to vector<8x8x128xf32>
    %24 = vector.shape_cast %23 : vector<8x8x128xf32> to vector<64x128xf32>
    %c1_19 = arith.constant 1 : index
    %c256_20 = arith.constant 256 : index
    %c0_21 = arith.constant 0 : index
    %25 = vector.load %arg4[%c1_19, %c256_20, %c0_21] : memref<3x384x128xf32, #tpu.memory_space<vmem>>, vector<1x128x128xf32>
    %26 = vector.shape_cast %25 : vector<1x128x128xf32> to vector<128x128xf32>
    %cst_22 = arith.constant dense<0.000000e+00> : vector<64x128xf32>
    %27 = tpu.matmul %24, %26, %cst_22 {dimension_numbers = #tpu.dot_dimension_numbers<[1], [0], [0], [1], [0, 0, 1, 1], [], []>} : vector<64x128xf32>, vector<128x128xf32>, vector<64x128xf32> -> vector<64x128xf32>
    %28 = arith.addf %22, %27 : vector<64x128xf32>
    %c0_23 = arith.constant 0 : index
    %c0_24 = arith.constant 0 : index
    %c0_25 = arith.constant 0 : index
    %c0_26 = arith.constant 0 : index
    %c0_27 = arith.constant 0 : index
    %29 = vector.load %arg3[%c0_23, %c0_24, %c0_25, %c0_26, %c0_27] : memref<1x1x2x9x256xf32, #tpu.memory_space<vmem>>, vector<1x1x1x9x256xf32>
    %30 = vector.shape_cast %29 : vector<1x1x1x9x256xf32> to vector<1x9x256xf32>
    %c0_28 = arith.constant 0 : index
    %c1_29 = arith.constant 1 : index
    %c0_30 = arith.constant 0 : index
    %c0_31 = arith.constant 0 : index
    %c0_32 = arith.constant 0 : index
    %31 = vector.load %arg2[%c0_28, %c1_29, %c0_30, %c0_31, %c0_32] : memref<1x8x2x9x256xf32, #tpu.memory_space<vmem>>, vector<1x7x1x9x256xf32>
    %32 = vector.shape_cast %31 : vector<1x7x1x9x256xf32> to vector<7x9x256xf32>
    %33 = tpu.concatenate %32, %30 in 0 : vector<7x9x256xf32>, vector<1x9x256xf32> -> vector<8x9x256xf32>
    %34 = vector.extract_strided_slice %33 {offsets = [0, 0, 0], sizes = [8, 8, 256], strides = [1, 1, 1]} : vector<8x9x256xf32> to vector<8x8x256xf32>
    %35 = vector.shape_cast %34 : vector<8x8x256xf32> to vector<64x256xf32>
    %c2 = arith.constant 2 : index
    %c0_33 = arith.constant 0 : index
    %c0_34 = arith.constant 0 : index
    %36 = vector.load %arg4[%c2, %c0_33, %c0_34] : memref<3x384x128xf32, #tpu.memory_space<vmem>>, vector<1x256x128xf32>
    %37 = vector.shape_cast %36 : vector<1x256x128xf32> to vector<256x128xf32>
    %cst_35 = arith.constant dense<0.000000e+00> : vector<64x128xf32>
    %38 = tpu.matmul %35, %37, %cst_35 {dimension_numbers = #tpu.dot_dimension_numbers<[1], [0], [0], [1], [0, 0, 1, 1], [], []>} : vector<64x256xf32>, vector<256x128xf32>, vector<64x128xf32> -> vector<64x128xf32>
    %39 = arith.addf %28, %38 : vector<64x128xf32>
    %40 = vector.extract_strided_slice %33 {offsets = [0, 1, 0], sizes = [8, 8, 128], strides = [1, 1, 1]} : vector<8x9x256xf32> to vector<8x8x128xf32>
    %41 = vector.shape_cast %40 : vector<8x8x128xf32> to vector<64x128xf32>
    %c2_36 = arith.constant 2 : index
    %c256_37 = arith.constant 256 : index
    %c0_38 = arith.constant 0 : index
    %42 = vector.load %arg4[%c2_36, %c256_37, %c0_38] : memref<3x384x128xf32, #tpu.memory_space<vmem>>, vector<1x128x128xf32>
    %43 = vector.shape_cast %42 : vector<1x128x128xf32> to vector<128x128xf32>
    %cst_39 = arith.constant dense<0.000000e+00> : vector<64x128xf32>
    %44 = tpu.matmul %41, %43, %cst_39 {dimension_numbers = #tpu.dot_dimension_numbers<[1], [0], [0], [1], [0, 0, 1, 1], [], []>} : vector<64x128xf32>, vector<128x128xf32>, vector<64x128xf32> -> vector<64x128xf32>
    %45 = arith.addf %39, %44 : vector<64x128xf32>
    %c0_40 = arith.constant 0 : index
    %c0_41 = arith.constant 0 : index
    %46 = vector.load %arg5[%c0_40, %c0_41] : memref<1x128xf32, #tpu.memory_space<vmem>>, vector<1x128xf32>
    %47 = vector.broadcast %46 : vector<1x128xf32> to vector<64x128xf32>
    %48 = arith.addf %45, %47 : vector<64x128xf32>
    %49 = vector.shape_cast %48 : vector<64x128xf32> to vector<8x8x128xf32>
    %c0_42 = arith.constant 0 : index
    %c0_43 = arith.constant 0 : index
    %c0_44 = arith.constant 0 : index
    %c0_45 = arith.constant 0 : index
    %50 = vector.load %arg6[%c0_42, %c0_43, %c0_44, %c0_45] : memref<1x8x8x128xf32, #tpu.memory_space<vmem>>, vector<1x8x8x128xf32>
    %51 = vector.shape_cast %50 : vector<1x8x8x128xf32> to vector<8x8x128xf32>
    %52 = vector.shape_cast %49 : vector<8x8x128xf32> to vector<1x8x8x128xf32>
    tpu.vector_store %arg6[%c0_42, %c0_43, %c0_44, %c0_45], %52 {strides = array<i32>} : memref<1x8x8x128xf32, #tpu.memory_space<vmem>>, vector<1x8x8x128xf32>,
    return
  }
  func.func @transform_0(%arg0: i32, %arg1: i32) -> (i32, i32, i32, i32, i32) {
    %c0_i32 = arith.constant 0 : i32
    %c0_i32_0 = arith.constant 0 : i32
    %c0_i32_1 = arith.constant 0 : i32
    %c0_i32_2 = arith.constant 0 : i32
    return %arg0, %arg1, %c0_i32, %c0_i32_0, %c0_i32_1 : i32, i32, i32, i32, i32
  }
  func.func @transform_1(%arg0: i32, %arg1: i32) -> (i32, i32, i32, i32, i32) {
    %c8_i32 = arith.constant 8 : i32
    %0 = arith.muli %arg1, %c8_i32 : i32
    %c8_i32_0 = arith.constant 8 : i32
    %1 = arith.addi %0, %c8_i32_0 : i32
    %c0_i32 = arith.constant 0 : i32
    %c0_i32_1 = arith.constant 0 : i32
    %c0_i32_2 = arith.constant 0 : i32
    %c0_i32_3 = arith.constant 0 : i32
    return %arg0, %1, %c0_i32, %c0_i32_1, %c0_i32_2 : i32, i32, i32, i32, i32
  }
  func.func @transform_2(%arg0: i32, %arg1: i32) -> (i32, i32, i32) {
    %c0_i32 = arith.constant 0 : i32
    %c0_i32_0 = arith.constant 0 : i32
    %c0_i32_1 = arith.constant 0 : i32
    %c0_i32_2 = arith.constant 0 : i32
    return %c0_i32, %c0_i32_0, %c0_i32_1 : i32, i32, i32
  }
  func.func @transform_3(%arg0: i32, %arg1: i32) -> (i32, i32) {
    %c0_i32 = arith.constant 0 : i32
    %c0_i32_0 = arith.constant 0 : i32
    %c0_i32_1 = arith.constant 0 : i32
    return %c0_i32, %c0_i32_0 : i32, i32
  }
  func.func @transform_4(%arg0: i32, %arg1: i32) -> (i32, i32, i32, i32) {
    %c0_i32 = arith.constant 0 : i32
    %c0_i32_0 = arith.constant 0 : i32
    %c0_i32_1 = arith.constant 0 : i32
    return %arg0, %arg1, %c0_i32, %c0_i32_0 : i32, i32, i32, i32
  }
}

</mosaic_0001>

<bundles_post_ra>
// kernel: _lambda_.1
= control target key start
LH: loop header
LB: loop body
LE: loop exit
PB: predicated region body
PF: predicated region fallthrough
CT: control target
= control target key end

     0   :  { %s2320_s15 = smov 0   ;;  %s2322_s16 = smov 0   ;;  %s3102_s0 = inlined_call_operand.vmem [shape: f32[2,9,2,9,256], index: 0, kind: input, shape index: {}, may-alias: {0,1}]   ;;  %s3103_s1 = inlined_call_operand.vmem [shape: f32[2,9,2,9,256], index: 1, kind: input, shape index: {}, may-alias: {0,1}]   ;;  %s3104_s2 = inlined_call_operand.vmem [shape: f32[3,384,128], index: 2, kind: input, shape index: {}]   ;;  %s3105_s3 = inlined_call_operand.vmem [shape: f32[1,128], index: 3, kind: input, shape index: {}]   ;;  %s3106_s4 = inlined_call_operand.vmem [shape: f32[2,8,8,128], index: 4, kind: output, shape index: {}]  }
   0x1   :  { %s2324_s17 = smov 0  }
   0x2 LB: > { %s26_s18 = sadd.s32 1, %s2289_s16  ;;  %p1488_p0 = scmp.ge.s32.totalorder %s2293_s17, 1  ;;  %s2293_s17 = sphi %s2324_s17, %s14_s17   ;;  %s2289_s16 = sphi %s2322_s16, %s3108_s16   ;;  %s2285_s15 = sphi %s2320_s15, %s3107_s15  }
   0x3   : > { %p28_p1 = scmp.ge.s32.totalorder %s26_s18, 2  ;;  %p222_p2 = scmp.lt.s32.totalorder %s2293_s17, 3 }
   0x5   : > { %s3110_s18 = smov (%p28_p1, %s26_s18), 0  ;;  %p223_p3 = pnand %p1488_p0, %p222_p2 }
   0x6   : > { %v428_v0 = vld [vmem:[%s3104_s2 + $0x100] sm:$0xff] (!%p223_p3)  ;;  %v429_v1 = vld [vmem:[%s3104_s2 + $0x108] sm:$0xff] (!%p223_p3)  ;;  %v430_v2 = vld [vmem:[%s3104_s2 + $0x110] sm:$0xff] (!%p223_p3)  ;;  %p283_p4 = scmp.lt.s32.totalorder (!%p223_p3), %s2285_s15, 1  ;;  %vm395_vm0 = vcmask (!%p223_p3), 1046528  }
   0x7   : > { %226 = sbr.rel (%p223_p3) target bundleno = 339 (0x153), region = 36  ;;  %v2012_v3 = vpack.c.bf16 (!%p223_p3), %v429_v1, %v428_v0  ;;  %v431_v4 = vld [vmem:[%s3104_s2 + $0x118] sm:$0xff] (!%p223_p3)  ;;  %v363_v5 = vld [vmem:[%s3104_s2 + $0x80] sm:$0xff] (!%p223_p3)  ;;  %v364_v6 = vld [vmem:[%s3104_s2 + $0x88] sm:$0xff] (!%p223_p3) }
   0x8   : > { %v2016_v7 = vpack.c.bf16 (!%p223_p3), %v431_v4, %v430_v2  ;;  %v2044_v8 = vpack.c.bf16 (!%p223_p3), %v364_v6, %v363_v5  ;;  %v347_v9 = vld [vmem:[%s3104_s2] sm:$0xff] (!%p223_p3)  ;;  %v348_v10 = vld [vmem:[%s3104_s2 + $0x8] sm:$0xff] (!%p223_p3)  ;;  %v365_v14 = vld [vmem:[%s3104_s2 + $0x90] sm:$0xff] (!%p223_p3) }
   0x9   : > { %v432_v11 = vld [vmem:[%s3104_s2 + $0x120] sm:$0xff] (!%p223_p3)  ;;  %2013 = vmatprep.subr.bf16.mxu0 (!%p223_p3), %v2012_v3  ;;  %v2046_v12 = vpack.c.bf16 (!%p223_p3), %v348_v10, %v347_v9  ;;  %v433_v13 = vld [vmem:[%s3104_s2 + $0x128] sm:$0xff] (!%p223_p3)  ;;  %v366_v15 = vld [vmem:[%s3104_s2 + $0x98] sm:$0xff] (!%p223_p3) }
   0xa   : > { %2015 = vmatpush3.bf16.msra.mxu0 (!%p223_p3), %v2012_v3  ;;  %2045 = vmatprep.subr.bf16.mxu1 (!%p223_p3), %v2044_v8  ;;  %v2048_v16 = vpack.c.bf16 (!%p223_p3), %v366_v15, %v365_v14  ;;  %v349_v17 = vld [vmem:[%s3104_s2 + $0x10] sm:$0xff] (!%p223_p3)  ;;  %v350_v18 = vld [vmem:[%s3104_s2 + $0x18] sm:$0xff] (!%p223_p3)  ;;  %v2020_v19 = vpack.c.bf16 (!%p223_p3), %v433_v13, %v432_v11  ;;  %v367_v22 = vld [vmem:[%s3104_s2 + $0xa0] sm:$0xff] (!%p223_p3) }
   0xb   : > { %2017 = vmatprep.subr.bf16.mxu0 (!%p223_p3), %v2016_v7  ;;  %2047 = vmatpush3.bf16.msra.mxu1 (!%p223_p3), %v2046_v12  ;;  %v2050_v20 = vpack.c.bf16 (!%p223_p3), %v350_v18, %v349_v17  ;;  %v434_v21 = vld [vmem:[%s3104_s2 + $0x130] sm:$0xff] (!%p223_p3)  ;;  %v368_v23 = vld [vmem:[%s3104_s2 + $0xa8] sm:$0xff] (!%p223_p3)  ;;  %v435_v24 = vld [vmem:[%s3104_s2 + $0x138] sm:$0xff] (!%p223_p3) }
   0xc   : > { %2049 = vmatprep.subr.bf16.mxu1 (!%p223_p3), %v2048_v16  ;;  %v2052_v25 = vpack.c.bf16 (!%p223_p3), %v368_v23, %v367_v22  ;;  %v351_v26 = vld [vmem:[%s3104_s2 + $0x20] sm:$0xff] (!%p223_p3)  ;;  %v352_v27 = vld [vmem:[%s3104_s2 + $0x28] sm:$0xff] (!%p223_p3)  ;;  %v369_v28 = vld [vmem:[%s3104_s2 + $0xb0] sm:$0xff] (!%p223_p3)  ;;  %v2024_v30 = vpack.c.bf16 (!%p223_p3), %v435_v24, %v434_v21 }
   0xd   : > { %v370_v29 = vld [vmem:[%s3104_s2 + $0xb8] sm:$0xff] (!%p223_p3)  ;;  %v2054_v31 = vpack.c.bf16 (!%p223_p3), %v352_v27, %v351_v26  ;;  %v436_v32 = vld [vmem:[%s3104_s2 + $0x140] sm:$0xff] (!%p223_p3)  ;;  %v437_v33 = vld [vmem:[%s3104_s2 + $0x148] sm:$0xff] (!%p223_p3) }
   0xe   : > { %s3112_s15 = smov (!%p283_p4, %s2285_s15), 1  ;;  %2019 = vmatpush3.bf16.msra.mxu0 %v2016_v7  ;;  %v2056_v34 = vpack.c.bf16 %v370_v29, %v369_v28  ;;  %v353_v35 = vld [vmem:[%s3104_s2 + $0x30] sm:$0xff]  ;;  %v354_v36 = vld [vmem:[%s3104_s2 + $0x38] sm:$0xff]  ;;  %v371_v37 = vld [vmem:[%s3104_s2 + $0xc0] sm:$0xff]  ;;  %v2028_v39 = vpack.c.bf16 %v437_v33, %v436_v32 }
   0xf   : > { %s2244_s19 = smul.u32 576, %s3112_s15  ;;  %2021 = vmatprep.subr.bf16.mxu0 %v2020_v19  ;;  %2051 = vmatpush3.bf16.msra.mxu1 %v2050_v20  ;;  %v372_v38 = vld [vmem:[%s3104_s2 + $0xc8] sm:$0xff]  ;;  %v2058_v40 = vpack.c.bf16 %v354_v36, %v353_v35  ;;  %v438_v41 = vld [vmem:[%s3104_s2 + $0x150] sm:$0xff]  ;;  %v439_v42 = vld [vmem:[%s3104_s2 + $0x158] sm:$0xff] }
  0x10   : > { %2053 = vmatprep.subr.bf16.mxu1 %v2052_v25  ;;  %v2060_v43 = vpack.c.bf16 %v372_v38, %v371_v37  ;;  %v355_v44 = vld [vmem:[%s3104_s2 + $0x40] sm:$0xff]  ;;  %v356_v45 = vld [vmem:[%s3104_s2 + $0x48] sm:$0xff]  ;;  %v373_v47 = vld [vmem:[%s3104_s2 + $0xd0] sm:$0xff]  ;;  %v2032_v52 = vpack.c.bf16 %v439_v42, %v438_v41 }
  0x11   : > { %s2431_s8 = scalar_lea.vmem %s3102_s0, %s2244_s19  ;;  %v374_v48 = vld [vmem:[%s3104_s2 + $0xd8] sm:$0xff]  ;;  %v2062_v53 = vpack.c.bf16 %v356_v45, %v355_v44  ;;  %v440_v54 = vld [vmem:[%s3104_s2 + $0x160] sm:$0xff]  ;;  %v441_v55 = vld [vmem:[%s3104_s2 + $0x168] sm:$0xff]  ;;  %s1638_s22 = sadd.s32 512, %s2244_s19 }
  0x12   : > { %2023 = vmatpush3.bf16.msra.mxu0 %v2020_v19  ;;  %v2446_v46 = vld [vmem:[%s2431_s8] sm:$0xff]  ;;  %v325_v49 = vld [vmem:[%s2431_s8 + $0x10] sm:$0x1]  ;;  %v2064_v56 = vpack.c.bf16 %v374_v48, %v373_v47  ;;  %v358_v58 = vld [vmem:[%s3104_s2 + $0x58] sm:$0xff]  ;;  %v2036_v63 = vpack.c.bf16 %v441_v55, %v440_v54  ;;  %s2835_s20 = scalar_lea.vmem %s3103_s1, %s1638_s22 }
  0x13   : > { %2025 = vmatprep.subr.bf16.mxu0 %v2024_v30  ;;  %2055 = vmatpush3.bf16.msra.mxu1 %v2054_v31  ;;  %v396_v50 = vrot.slane %v2446_v46, 1  ;;  %v397_v51 = vrot.slane %v325_v49, 1  ;;  %v357_v57 = vld [vmem:[%s3104_s2 + $0x50] sm:$0xff]  ;;  %v324_v60 = vld [vmem:[%s2431_s8 + $0x8] sm:$0xff]  ;;  %v375_v61 = vld [vmem:[%s3104_s2 + $0xe0] sm:$0xff] }
  0x14   : > { %2057 = vmatprep.subr.bf16.mxu1 %v2056_v34  ;;  %v376_v62 = vld [vmem:[%s3104_s2 + $0xe8] sm:$0xff]  ;;  %613 = vmatprep.mubr.f32.mxu1 %v324_v60  ;;  %v2066_v0 = vpack.c.bf16 %v358_v58, %v357_v57  ;;  %v442_v1 = vld [vmem:[%s3104_s2 + $0x170] sm:$0xff]  ;;  %v443_v2 = vld [vmem:[%s3104_s2 + $0x178] sm:$0xff] }
  0x15   : > { %v398_v59 = vsel %vm395_vm0, %v396_v50, %v397_v51  ;;  %v2068_v3 = vpack.c.bf16 %v376_v62, %v375_v61  ;;  %v359_v4 = vld [vmem:[%s3104_s2 + $0x60] sm:$0xff]  ;;  %v360_v5 = vld [vmem:[%s3104_s2 + $0x68] sm:$0xff]  ;;  %v377_v6 = vld [vmem:[%s3104_s2 + $0xf0] sm:$0xff]  ;;  %v2040_v8 = vpack.c.bf16 %v443_v2, %v442_v1 }
  0x16   : > { %2027 = vmatpush3.bf16.msra.mxu0 %v2024_v30  ;;  %1912 = vmatprep.mubr.f32.mxu0 %v398_v59  ;;  %v378_v7 = vld [vmem:[%s3104_s2 + $0xf8] sm:$0xff]  ;;  %v2070_v9 = vpack.c.bf16 %v360_v5, %v359_v4  ;;  %v1533_v10 = vld [vmem:[%s3104_s2 + $0x200] sm:$0xff]  ;;  %v328_v12 = vld [vmem:[%s2431_s8 + $0x50] sm:$0x1] }
  0x17   : > { %2029 = vmatprep.subr.bf16.mxu0 %v2028_v39  ;;  %2059 = vmatpush3.bf16.msra.mxu1 %v2058_v40  ;;  %v2498_v11 = vld [vmem:[%s2431_s8 + $0x40] sm:$0xff]  ;;  %v2072_v13 = vpack.c.bf16 %v378_v7, %v377_v6  ;;  %v1534_v14 = vld [vmem:[%s3104_s2 + $0x208] sm:$0xff]  ;;  %v361_v15 = vld [vmem:[%s3104_s2 + $0x70] sm:$0xff]  ;;  %v400_v20 = vrot.slane %v328_v12, 1 }
  0x18   : > { %2061 = vmatprep.subr.bf16.mxu1 %v2060_v43  ;;  %v362_v16 = vld [vmem:[%s3104_s2 + $0x78] sm:$0xff]  ;;  %v1602_v17 = vld [vmem:[%s3104_s2 + $0x380] sm:$0xff]  ;;  %v1603_v18 = vld [vmem:[%s3104_s2 + $0x388] sm:$0xff]  ;;  %v399_v19 = vrot.slane %v2498_v11, 1  ;;  %v2076_v22 = vpack.c.bf16 %v1534_v14, %v1533_v10 }
  0x19   : > { %v1517_v21 = vld [vmem:[%s3104_s2 + $0x180] sm:$0xff]  ;;  %v2074_v23 = vpack.c.bf16 %v362_v16, %v361_v15  ;;  %v1518_v24 = vld [vmem:[%s3104_s2 + $0x188] sm:$0xff]  ;;  %v1535_v25 = vld [vmem:[%s3104_s2 + $0x210] sm:$0xff]  ;;  %v2140_v27 = vpack.c.bf16 %v1603_v18, %v1602_v17 }
  0x1a   : > { %2031 = vmatpush3.bf16.msra.mxu0 %v2028_v39  ;;  %v1536_v26 = vld [vmem:[%s3104_s2 + $0x218] sm:$0xff]  ;;  %v1586_v28 = vld [vmem:[%s3104_s2 + $0x300] sm:$0xff]  ;;  %v1587_v29 = vld [vmem:[%s3104_s2 + $0x308] sm:$0xff]  ;;  %v401_v34 = vsel %vm395_vm0, %v399_v19, %v400_v20  ;;  %v2078_v35 = vpack.c.bf16 %v1518_v24, %v1517_v21 }
  0x1b   : > { %2033 = vmatprep.subr.bf16.mxu0 %v2032_v52  ;;  %2063 = vmatpush3.bf16.msra.mxu1 %v2062_v53  ;;  %v1604_v30 = vld [vmem:[%s3104_s2 + $0x390] sm:$0xff]  ;;  %v1605_v31 = vld [vmem:[%s3104_s2 + $0x398] sm:$0xff]  ;;  %v2542_v32 = vld [vmem:[%s2431_s8 + $0x80] sm:$0xff]  ;;  %v2080_v40 = vpack.c.bf16 %v1536_v26, %v1535_v25  ;;  %v2142_v41 = vpack.c.bf16 %v1587_v29, %v1586_v28 }
  0x1c   : > { %2065 = vmatprep.subr.bf16.mxu1 %v2064_v56  ;;  %v331_v33 = vld [vmem:[%s2431_s8 + $0x90] sm:$0x1]  ;;  %v1520_v37 = vld [vmem:[%s3104_s2 + $0x198] sm:$0xff]  ;;  %v402_v38 = vrot.slane %v2542_v32, 1  ;;  %v2556_v42 = vld [vmem:[%s2431_s8 + $0x48] sm:$0xff]  ;;  %v2144_v47 = vpack.c.bf16 %v1605_v31, %v1604_v30 }
  0x1d   : > { %v1519_v36 = vld [vmem:[%s3104_s2 + $0x190] sm:$0xff]  ;;  %v403_v39 = vrot.slane %v331_v33, 1  ;;  %v1537_v43 = vld [vmem:[%s3104_s2 + $0x220] sm:$0xff]  ;;  %v1538_v45 = vld [vmem:[%s3104_s2 + $0x228] sm:$0xff] }
  0x1e   : > { %2035 = vmatpush3.bf16.msra.mxu0 %v2032_v52  ;;  %v334_v44 = vld [vmem:[%s2431_s8 + $0xd0] sm:$0x1]  ;;  %v1589_v49 = vld [vmem:[%s3104_s2 + $0x318] sm:$0xff]  ;;  %v1606_v50 = vld [vmem:[%s3104_s2 + $0x3a0] sm:$0xff]  ;;  %v2082_v53 = vpack.c.bf16 %v1520_v37, %v1519_v36 }
  0x1f   : > { %2037 = vmatprep.subr.bf16.mxu0 %v2036_v63  ;;  %2067 = vmatpush3.bf16.msra.mxu1 %v2066_v0  ;;  %v1588_v48 = vld [vmem:[%s3104_s2 + $0x310] sm:$0xff]  ;;  %v1607_v51 = vld [vmem:[%s3104_s2 + $0x3a8] sm:$0xff]  ;;  %v2578_v52 = vld [vmem:[%s2431_s8 + $0xc0] sm:$0xff]  ;;  %v404_v57 = vsel %vm395_vm0, %v402_v38, %v403_v39  ;;  %v406_v58 = vrot.slane %v334_v44, 1 }
  0x20   : > { %2069 = vmatprep.subr.bf16.mxu1 %v2068_v3  ;;  %v1521_v54 = vld [vmem:[%s3104_s2 + $0x1a0] sm:$0xff]  ;;  %v1522_v55 = vld [vmem:[%s3104_s2 + $0x1a8] sm:$0xff]  ;;  %v405_v56 = vrot.slane %v2578_v52, 1  ;;  %v2146_v59 = vpack.c.bf16 %v1589_v49, %v1588_v48  ;;  %v1539_v60 = vld [vmem:[%s3104_s2 + $0x230] sm:$0xff]  ;;  %v2148_v0 = vpack.c.bf16 %v1607_v51, %v1606_v50 }
  0x21   : > { %v2595_v61 = vld [vmem:[%s2431_s8 + $0x100] sm:$0xff]  ;;  %v337_v62 = vld [vmem:[%s2431_s8 + $0x110] sm:$0x1]  ;;  %v1591_v2 = vld [vmem:[%s3104_s2 + $0x328] sm:$0xff]  ;;  %v2086_v6 = vpack.c.bf16 %v1522_v55, %v1521_v54 }
  0x22   : > { %2039 = vmatpush3.bf16.msra.mxu0 %v2036_v63  ;;  %v1540_v63 = vld [vmem:[%s3104_s2 + $0x238] sm:$0xff]  ;;  %v1590_v1 = vld [vmem:[%s3104_s2 + $0x320] sm:$0xff]  ;;  %v2609_v3 = vld [vmem:[%s2431_s8 + $0x88] sm:$0xff]  ;;  %v408_v10 = vrot.slane %v2595_v61, 1  ;;  %v409_v12 = vrot.slane %v337_v62, 1 }
  0x23   : > { %2041 = vmatprep.subr.bf16.mxu0 %v2040_v8  ;;  %2071 = vmatpush3.bf16.msra.mxu1 %v2070_v9  ;;  %v1608_v4 = vld [vmem:[%s3104_s2 + $0x3b0] sm:$0xff]  ;;  %v1609_v5 = vld [vmem:[%s3104_s2 + $0x3b8] sm:$0xff]  ;;  %v407_v9 = vsel %vm395_vm0, %v405_v56, %v406_v58  ;;  %v2150_v14 = vpack.c.bf16 %v1591_v2, %v1590_v1  ;;  %v1541_v15 = vld [vmem:[%s3104_s2 + $0x240] sm:$0xff] }
  0x24   : > { %2073 = vmatprep.subr.bf16.mxu1 %v2072_v13  ;;  %v1523_v7 = vld [vmem:[%s3104_s2 + $0x1b0] sm:$0xff]  ;;  %v2088_v13 = vpack.c.bf16 %v1540_v63, %v1539_v60  ;;  %v2632_v16 = vld [vmem:[%s2431_s8 + $0x140] sm:$0xff]  ;;  %v1542_v18 = vld [vmem:[%s3104_s2 + $0x248] sm:$0xff]  ;;  %v2152_v20 = vpack.c.bf16 %v1609_v5, %v1608_v4  ;;  %v410_v29 = vsel %vm395_vm0, %v408_v10, %v409_v12 }
  0x25   : > { %v340_v17 = vld [vmem:[%s2431_s8 + $0x150] sm:$0x1]  ;;  %v1610_v24 = vld [vmem:[%s3104_s2 + $0x3c0] sm:$0xff]  ;;  %v1611_v25 = vld [vmem:[%s3104_s2 + $0x3c8] sm:$0xff]  ;;  %v411_v30 = vrot.slane %v2632_v16, 1  ;;  %v2092_v33 = vpack.c.bf16 %v1542_v18, %v1541_v15 }
  0x26   : > { %2043 = vmatpush3.bf16.msra.mxu0 %v2040_v8  ;;  %v1524_v8 = vld [vmem:[%s3104_s2 + $0x1b8] sm:$0xff]  ;;  %v1592_v21 = vld [vmem:[%s3104_s2 + $0x330] sm:$0xff]  ;;  %v1526_v28 = vld [vmem:[%s3104_s2 + $0x1c8] sm:$0xff]  ;;  %v412_v31 = vrot.slane %v340_v17, 1 }
  0x27   : > { %2077 = vmatprep.subr.bf16.mxu0 %v2076_v22  ;;  %2075 = vmatpush3.bf16.msra.mxu1 %v2074_v23  ;;  %v1593_v22 = vld [vmem:[%s3104_s2 + $0x338] sm:$0xff]  ;;  %v2646_v23 = vld [vmem:[%s2431_s8 + $0xc8] sm:$0xff]  ;;  %v2090_v26 = vpack.c.bf16 %v1524_v8, %v1523_v7  ;;  %v2669_v36 = vld [vmem:[%s2431_s8 + $0x180] sm:$0xff] }
  0x28   : > { %2141 = vmatprep.subr.bf16.mxu1 %v2140_v27  ;;  %v1525_v27 = vld [vmem:[%s3104_s2 + $0x1c0] sm:$0xff]  ;;  %v343_v37 = vld [vmem:[%s2431_s8 + $0x190] sm:$0x1]  ;;  %v1544_v39 = vld [vmem:[%s3104_s2 + $0x258] sm:$0xff]  ;;  %v413_v49 = vsel %vm395_vm0, %v411_v30, %v412_v31  ;;  %v414_v50 = vrot.slane %v2669_v36, 1 }
  0x29   : > { %1913 = vmatmul.mubr.f32.vlgmr.msra.gmra.mrb[0].mxu0 %v401_v34  ;;  %v2154_v34 = vpack.c.bf16 %v1593_v22, %v1592_v21  ;;  %v2683_v44 = vld [vmem:[%s2431_s8 + $0x108] sm:$0xff]  ;;  %v2094_v48 = vpack.c.bf16 %v1526_v28, %v1525_v27  ;;  %v415_v51 = vrot.slane %v343_v37, 1  ;;  %v346_v54 = vld [vmem:[%s2431_s8 + $0x1d0] sm:$0x1]  ;;  %v1528_v58 = vld [vmem:[%s3104_s2 + $0x1d8] sm:$0xff] }
  0x2a   : > { %2079 = vmatpush3.bf16.msra.mxu0 %v2078_v35  ;;  %614 = vmatmul.mubr.f32.vlgmr.msra.gmra.mrb[0].mxu1 %v2446_v46  ;;  %v2084_v46 = vpack.c.bf16 %v1538_v45, %v1537_v43  ;;  %v1543_v35 = vld [vmem:[%s3104_s2 + $0x250] sm:$0xff]  ;;  %v1595_v43 = vld [vmem:[%s3104_s2 + $0x348] sm:$0xff]  ;;  %v418_v4 = vrot.slane %v346_v54, 1  ;;  %v1614_v8 = vld [vmem:[%s3104_s2 + $0x3e0] sm:$0xff] }
  0x2b   : > { %2081 = vmatprep.subr.bf16.mxu0 %v2080_v40  ;;  %2143 = vmatpush3.bf16.msra.mxu1 %v2142_v41  ;;  %v2156_v40 = vpack.c.bf16 %v1611_v25, %v1610_v24  ;;  %v1594_v41 = vld [vmem:[%s3104_s2 + $0x340] sm:$0xff]  ;;  %v1612_v45 = vld [vmem:[%s3104_s2 + $0x3d0] sm:$0xff]  ;;  %v2096_v55 = vpack.c.bf16 %v1544_v39, %v1543_v35  ;;  %v1546_v60 = vld [vmem:[%s3104_s2 + $0x268] sm:$0xff]  ;;  %v416_v7 = vsel %vm395_vm0, %v414_v50, %v415_v51 }
  0x2c   : > { %618 = vmatprep.mubr.f32.mxu1 %v2556_v42  ;;  %2145 = vmatprep.subr.bf16.mxu1 %v2144_v47  ;;  %v1613_v47 = vld [vmem:[%s3104_s2 + $0x3d8] sm:$0xff]  ;;  %v1596_v63 = vld [vmem:[%s3104_s2 + $0x350] sm:$0xff]  ;;  %v2720_v1 = vld [vmem:[%s2431_s8 + $0x148] sm:$0xff] }
  0x2d   : > { %1915 = vmatprep.mubr.f32.mxu0 %v404_v57  ;;  %v1527_v57 = vld [vmem:[%s3104_s2 + $0x1d0] sm:$0xff]  ;;  %v2160_v62 = vpack.c.bf16 %v1613_v47, %v1612_v45  ;;  %v2740_v15 = vld [vmem:[%s2431_s8 + $0x188] sm:$0xff]  ;;  %v1548_v18 = vld [vmem:[%s3104_s2 + $0x278] sm:$0xff] }
  0x2e   : > { %2083 = vmatpush3.bf16.msra.mxu0 %v2082_v53  ;;  %619 = vmatmul.mubr.f32.gmra.mrb[2].mxu1 %v2498_v11  ;;  %v2697_v53 = vld [vmem:[%s2431_s8 + $0x1c0] sm:$0xff]  ;;  %v2098_v5 = vpack.c.bf16 %v1528_v58, %v1527_v57  ;;  %v1547_v17 = vld [vmem:[%s3104_s2 + $0x270] sm:$0xff]  ;;  %v1599_v21 = vld [vmem:[%s3104_s2 + $0x368] sm:$0xff] }
  0x2f   : > { %2085 = vmatprep.subr.bf16.mxu0 %v2084_v46  ;;  %2147 = vmatpush3.bf16.msra.mxu1 %v2146_v59  ;;  %v2158_v46 = vpack.c.bf16 %v1595_v43, %v1594_v41  ;;  %v1545_v59 = vld [vmem:[%s3104_s2 + $0x260] sm:$0xff]  ;;  %v417_v2 = vrot.slane %v2697_v53, 1  ;;  %v2761_v25 = vld [vmem:[%s3104_s2 + $0x1f0] sm:$0xff]  ;;  %v1494_v27 = vld [vmem:[%s2431_s8 + $0x28] sm:$0xff]  ;;  %v2104_v37 = vpack.c.bf16 %v1548_v18, %v1547_v17 }
  0x30   : > { %623 = vmatprep.mubr.f32.mxu1 %v2609_v3  ;;  %2149 = vmatprep.subr.bf16.mxu1 %v2148_v0  ;;  %v1597_v0 = vld [vmem:[%s3104_s2 + $0x358] sm:$0xff]  ;;  %v2100_v12 = vpack.c.bf16 %v1546_v60, %v1545_v59  ;;  %v1616_v28 = vld [vmem:[%s3104_s2 + $0x3f0] sm:$0xff]  ;;  %v1550_v35 = vld [vmem:[%s3104_s2 + $0x288] sm:$0xff] }
  0x31   : > { %1916 = vmatmul.mubr.f32.gmra.mrb[2].mxu0 %v407_v9  ;;  %v1615_v9 = vld [vmem:[%s3104_s2 + $0x3e8] sm:$0xff]  ;;  %v419_v22 = vsel %vm395_vm0, %v417_v2, %v418_v4  ;;  %v2793_v41 = vld [vmem:[%s3104_s2 + $0x370] sm:$0xff]  ;;  %v1601_v43 = vld [vmem:[%s3104_s2 + $0x378] sm:$0xff] }
  0x32   : > { %2087 = vmatpush3.bf16.msra.mxu0 %v2086_v6  ;;  %624 = vmatmul.mubr.f32.gmra.mrb[4].mxu1 %v2542_v32  ;;  %v1529_v6 = vld [vmem:[%s3104_s2 + $0x1e0] sm:$0xff]  ;;  %v2164_v24 = vpack.c.bf16 %v1615_v9, %v1614_v8  ;;  %v1619_v54 = vld [vmem:[%s3104_s2 + $0x408] sm:$0xff]  ;;  %v1620_v4 = vld [vmem:[%s3104_s2 + $0x410] sm:$0xff] }
  0x33   : > { %2089 = vmatprep.subr.bf16.mxu0 %v2088_v13  ;;  %2151 = vmatpush3.bf16.msra.mxu1 %v2150_v14  ;;  %v1530_v13 = vld [vmem:[%s3104_s2 + $0x1e8] sm:$0xff]  ;;  %v2162_v14 = vpack.c.bf16 %v1597_v0, %v1596_v63  ;;  %v2799_v45 = vld [vmem:[%s2431_s8 + $0x60] sm:$0xff]  ;;  %v1495_v9 = vld [vmem:[%s2431_s8 + $0x30] sm:$0x1] }
  0x34   : > { %628 = vmatprep.mubr.f32.mxu1 %v2646_v23  ;;  %2153 = vmatprep.subr.bf16.mxu1 %v2152_v20  ;;  %v1598_v20 = vld [vmem:[%s3104_s2 + $0x360] sm:$0xff]  ;;  %v2102_v31 = vpack.c.bf16 %v1530_v13, %v1529_v6  ;;  %v844_v57 = vrot.slane %v2799_v45, 1  ;;  %v1554_v59 = vld [vmem:[%s3104_s2 + $0x2a8] sm:$0xff]  ;;  %v2170_v13 = vpack.c.bf16 %v1601_v43, %v2793_v41  ;;  %v842_v18 = vrot.slane %v1495_v9, 1  ;;  %v1567_v41 = vld [vmem:[%s2431_s8 + $0x50] sm:$0x1] }
  0x35   : > { %1918 = vmatprep.mubr.f32.mxu0 %v410_v29  ;;  %v1617_v29 = vld [vmem:[%s3104_s2 + $0x3f8] sm:$0xff]  ;;  %v2166_v39 = vpack.c.bf16 %v1599_v21, %v1598_v20  ;;  %v1618_v51 = vld [vmem:[%s3104_s2 + $0x400] sm:$0xff]  ;;  %v1004_v20 = vld [vmem:[%s2835_s20 + $0x10] sm:$0x1] }
  0x36   : > { %2091 = vmatpush3.bf16.msra.mxu0 %v2090_v26  ;;  %629 = vmatmul.mubr.f32.gmra.mrb[6].mxu1 %v2578_v52  ;;  %v2766_v26 = vld [vmem:[%s3104_s2 + $0x1f8] sm:$0xff]  ;;  %v2168_v47 = vpack.c.bf16 %v1617_v29, %v1616_v28  ;;  %v2826_v60 = vld [vmem:[%s2431_s8 + $0xe0] sm:$0xff]  ;;  %v1498_v21 = vld [vmem:[%s2431_s8 + $0x70] sm:$0x1]  ;;  %v1211_v28 = vrot.slane %v1004_v20, 1 }
  0x37   : > { %2093 = vmatprep.subr.bf16.mxu0 %v2092_v33  ;;  %2155 = vmatpush3.bf16.msra.mxu1 %v2154_v34  ;;  %v2777_v33 = vld [vmem:[%s2431_s8 + $0x20] sm:$0xff]  ;;  %v2106_v0 = vpack.c.bf16 %v2766_v26, %v2761_v25  ;;  %v850_v6 = vrot.slane %v2826_v60, 1  ;;  %v845_v26 = vrot.slane %v1498_v21, 1  ;;  %v1497_v29 = vld [vmem:[%s2431_s8 + $0x68] sm:$0xff]  ;;  %v1507_v20 = vld [vmem:[%s2431_s8 + $0x130] sm:$0x1] }
  0x38   : > { %633 = vmatprep.mubr.f32.mxu1 %v2683_v44  ;;  %2157 = vmatprep.subr.bf16.mxu1 %v2156_v40  ;;  %v1549_v34 = vld [vmem:[%s3104_s2 + $0x280] sm:$0xff]  ;;  %v2788_v40 = vld [vmem:[%s2431_s8 + $0x1c8] sm:$0xff]  ;;  %v841_v63 = vrot.slane %v2777_v33, 1 }
  0x39   : > { %1919 = vmatmul.mubr.f32.gmra.mrb[4].mxu0 %v413_v49  ;;  %v1552_v49 = vld [vmem:[%s3104_s2 + $0x298] sm:$0xff]  ;;  %v2849_v8 = vld [vmem:[%s2431_s8 + $0x160] sm:$0xff] }
  0x3a   : > { %2095 = vmatpush3.bf16.msra.mxu0 %v2094_v48  ;;  %634 = vmatmul.mubr.f32.gmra.mrb[8].mxu1 %v2595_v61  ;;  %v1551_v48 = vld [vmem:[%s3104_s2 + $0x290] sm:$0xff]  ;;  %v2856_v17 = vld [vmem:[%s2431_s8 + $0x1a0] sm:$0xff] }
  0x3b   : > { %2097 = vmatprep.subr.bf16.mxu0 %v2096_v55  ;;  %2159 = vmatpush3.bf16.msra.mxu1 %v2158_v46  ;;  %v2815_v55 = vld [vmem:[%s2431_s8 + $0xa0] sm:$0xff] }
  0x3c   : > { %638 = vmatprep.mubr.f32.mxu1 %v2720_v1  ;;  %2161 = vmatprep.subr.bf16.mxu1 %v2160_v62  ;;  %v847_v58 = vrot.slane %v2815_v55, 1  ;;  %v1553_v46 = vld [vmem:[%s3104_s2 + $0x2a0] sm:$0xff] }
  0x3d   : > { %1921 = vmatprep.mubr.f32.mxu0 %v416_v7  ;;  %v2829_v62 = vld [vmem:[%s2431_s8 + $0x120] sm:$0xff]  ;;  %v2880_v43 = vpack.c.bf16 %v1554_v59, %v1553_v46  ;;  %v1623_v46 = vld [vmem:[%s3104_s2 + $0x428] sm:$0xff] }
  0x3e   : > { %2099 = vmatpush3.bf16.msra.mxu0 %v2098_v5  ;;  %639 = vmatmul.mubr.f32.gmra.mrb[10].mxu1 %v2632_v16  ;;  %v1621_v5 = vld [vmem:[%s3104_s2 + $0x418] sm:$0xff]  ;;  %v853_v7 = vrot.slane %v2829_v62, 1  ;;  %v2864_v25 = vld [vmem:[%s2431_s8 + $0x1e0] sm:$0xff] }
  0x3f   : > { %2101 = vmatprep.subr.bf16.mxu0 %v2100_v12  ;;  %2163 = vmatpush3.bf16.msra.mxu1 %v2162_v14  ;;  %v2108_v12 = vpack.c.bf16 %v1550_v35, %v1549_v34  ;;  %v2853_v14 = vpack.c.bf16 %v1619_v54, %v1618_v51  ;;  %v862_v34 = vrot.slane %v2864_v25, 1  ;;  %v2874_v35 = vsel %vm395_vm0, %v841_v63, %v842_v18  ;;  %v1504_v51 = vld [vmem:[%s2431_s8 + $0xf0] sm:$0x1] }
  0x40   : > { %643 = vmatprep.mubr.f32.mxu1 %v2740_v15  ;;  %1922 = vmatmul.mubr.f32.gmra.mrb[6].mxu0 %v419_v22  ;;  %v856_v22 = vrot.slane %v2849_v8, 1  ;;  %v1570_v54 = vld [vmem:[%s2431_s8 + $0x90] sm:$0x1]  ;;  %v2176_v63 = vpack.c.bf16 %v1621_v5, %v1620_v4  ;;  %v851_v9 = vrot.slane %v1504_v51, 1 }
  0x41   : > { %2165 = vmatprep.subr.bf16.mxu1 %v2164_v24  ;;  %776 = vmatprep.mubr.f32.mxu0 %v1494_v27  ;;  %v859_v24 = vrot.slane %v2856_v17, 1  ;;  %v2867_v27 = vld [vmem:[%s2835_s20] sm:$0xff]  ;;  %v1193_v18 = vrot.slane %v1570_v54, 1  ;;  %v1582_v51 = vld [vmem:[%s2431_s8 + $0x190] sm:$0x1] }
  0x42   : > { %2103 = vmatpush3.bf16.msra.mxu0 %v2102_v31  ;;  %644 = vmatmul.mubr.f32.gmra.mrb[12].mxu1 %v2669_v36  ;;  %v2870_v31 = vpack.c.bf16 %v1552_v49, %v1551_v48  ;;  %v1190_v49 = vrot.slane %v1567_v41, 1  ;;  %v1579_v41 = vld [vmem:[%s2431_s8 + $0x150] sm:$0x1] }
  0x43   : > { %2105 = vmatprep.subr.bf16.mxu0 %v2104_v37  ;;  %2167 = vmatpush3.bf16.msra.mxu1 %v2166_v39  ;;  %v1210_v37 = vrot.slane %v2867_v27, 1  ;;  %v1501_v39 = vld [vmem:[%s2431_s8 + $0xb0] sm:$0x1] }
  0x44   : > { %648 = vmatprep.mubr.f32.mxu1 %v2788_v40  ;;  %2169 = vmatprep.subr.bf16.mxu1 %v2168_v47  ;;  %v2883_v47 = vsel %vm395_vm0, %v844_v57, %v845_v26  ;;  %v848_v48 = vrot.slane %v1501_v39, 1  ;;  %v1622_v57 = vld [vmem:[%s3104_s2 + $0x420] sm:$0xff]  ;;  %v2906_v4 = vsel %vm395_vm0, %v399_v19, %v1190_v49  ;;  %v1576_v26 = vld [vmem:[%s2431_s8 + $0x110] sm:$0x1] }
  0x45   : > { %v2890_v21 = vsel %vm395_vm0, %v1210_v37, %v1211_v28  ;;  %v2912_v28 = vsel %vm395_vm0, %v850_v6, %v851_v9  ;;  %v1199_v19 = vrot.slane %v1576_v26, 1  ;;  %v1513_v39 = vld [vmem:[%s2431_s8 + $0x1b0] sm:$0x1]  ;;  %v1562_v26 = vld [vmem:[%s3104_s2 + $0x2e8] sm:$0xff] }
  0x46   : > { %2107 = vmatpush3.bf16.msra.mxu0 %v2106_v0  ;;  %649 = vmatmul.mubr.f32.gmra.mrb[14].mxu1 %v2697_v53  ;;  %v1573_v0 = vld [vmem:[%s2431_s8 + $0xd0] sm:$0x1]  ;;  %v2901_v59 = vsel %vm395_vm0, %v847_v58, %v848_v48  ;;  %v2917_v58 = vsel %vm395_vm0, %v402_v38, %v1193_v18  ;;  %v860_v48 = vrot.slane %v1513_v39, 1  ;;  %v1202_v38 = vrot.slane %v1579_v41, 1  ;;  %v1564_v41 = vld [vmem:[%s3104_s2 + $0x2f8] sm:$0xff] }
  0x47   : > { %2109 = vmatprep.subr.bf16.mxu0 %v2108_v12  ;;  %2171 = vmatpush3.bf16.msra.mxu1 %v2170_v13  ;;  %v1196_v5 = vrot.slane %v1573_v0, 1  ;;  %v1510_v13 = vld [vmem:[%s2431_s8 + $0x170] sm:$0x1]  ;;  %v2180_v18 = vpack.c.bf16 %v1623_v46, %v1622_v57  ;;  %v1557_v0 = vld [vmem:[%s3104_s2 + $0x2c0] sm:$0xff]  ;;  %v1558_v57 = vld [vmem:[%s3104_s2 + $0x2c8] sm:$0xff] }
  0x48   : > { %1124 = vmatprep.mubr.f32.mxu1 %v2556_v42  ;;  %2173 = vmatprep.subr.bf16.mxu1 %v2853_v14  ;;  %v854_v42 = vrot.slane %v1507_v20, 1  ;;  %v857_v37 = vrot.slane %v1510_v13, 1  ;;  %v1516_v49 = vld [vmem:[%s2431_s8 + $0x1f0] sm:$0x1]  ;;  %v2124_v46 = vpack.c.bf16 %v1558_v57, %v1557_v0 }
  0x49   : > { %777 = vmatmul.mubr.f32.vlgmr.msra.gmra.mrb[8].mxu0 %v2777_v33  ;;  %v2929_v6 = vsel %vm395_vm0, %v405_v56, %v1196_v5  ;;  %v863_v54 = vrot.slane %v1516_v49, 1  ;;  %v1205_v56 = vrot.slane %v1582_v51, 1  ;;  %v1585_v9 = vld [vmem:[%s2431_s8 + $0x1d0] sm:$0x1]  ;;  %v1509_v5 = vld [vmem:[%s2431_s8 + $0x168] sm:$0xff] }
  0x4a   : > { %2111 = vmatpush3.bf16.msra.mxu0 %v2108_v12  ;;  %781 = vmatprep.mubr.f32.mxu0 %v1497_v29  ;;  %v2924_v33 = vsel %vm395_vm0, %v853_v7, %v854_v42  ;;  %v1500_v12 = vld [vmem:[%s2431_s8 + $0xa8] sm:$0xff]  ;;  %v2937_v29 = vsel %vm395_vm0, %v856_v22, %v857_v37  ;;  %v2942_v7 = vsel %vm395_vm0, %v408_v10, %v1199_v19  ;;  %v1556_v22 = vld [vmem:[%s3104_s2 + $0x2b8] sm:$0xff] }
  0x4b   : > { %2113 = vmatprep.subr.bf16.mxu0 %v2870_v31  ;;  %1125 = vmatmul.mubr.f32.vlgmr.msra.gmra.mrb[16].mxu1 %v2498_v11  ;;  %v1555_v11 = vld [vmem:[%s3104_s2 + $0x2b0] sm:$0xff]  ;;  %v2956_v10 = vsel %vm395_vm0, %v859_v24, %v860_v48  ;;  %v2967_v20 = vsel %vm395_vm0, %v862_v34, %v863_v54  ;;  %v2972_v24 = vsel %vm395_vm0, %v414_v50, %v1205_v56  ;;  %v1503_v50 = vld [vmem:[%s2431_s8 + $0xe8] sm:$0xff] }
  0x4c   : > { %2175 = vmatpush3.bf16.msra.mxu1 %v2853_v14  ;;  %1129 = vmatprep.mubr.f32.mxu1 %v2609_v3  ;;  %v2961_v14 = vsel %vm395_vm0, %v411_v30, %v1202_v38  ;;  %v1208_v3 = vrot.slane %v1585_v9, 1  ;;  %v1624_v30 = vld [vmem:[%s3104_s2 + $0x430] sm:$0xff]  ;;  %v1512_v19 = vld [vmem:[%s2431_s8 + $0x1a8] sm:$0xff] }
  0x4d   : > { %782 = vmatmul.mubr.f32.gmra.mrb[10].mxu0 %v2799_v45  ;;  %2177 = vmatprep.subr.bf16.mxu1 %v2176_v63  ;;  %v1625_v45 = vld [vmem:[%s3104_s2 + $0x438] sm:$0xff]  ;;  %v1515_v38 = vld [vmem:[%s2431_s8 + $0x1e8] sm:$0xff] }
  0x4e   : > { %2115 = vmatpush3.bf16.msra.mxu0 %v2870_v31  ;;  %786 = vmatprep.mubr.f32.mxu0 %v1500_v12  ;;  %v2984_v34 = vsel %vm395_vm0, %v417_v2, %v1208_v3  ;;  %v2120_v31 = vpack.c.bf16 %v1556_v22, %v1555_v11  ;;  %v2184_v2 = vpack.c.bf16 %v1625_v45, %v1624_v30 }
  0x4f   : > { %2117 = vmatprep.subr.bf16.mxu0 %v2880_v43  ;;  %1130 = vmatmul.mubr.f32.gmra.mrb[18].mxu1 %v2542_v32  ;;  %v1626_v32 = vld [vmem:[%s3104_s2 + $0x440] sm:$0xff] }
  0x50   : > { %2179 = vmatpush3.bf16.msra.mxu1 %v2176_v63  ;;  %1134 = vmatprep.mubr.f32.mxu1 %v2646_v23  ;;  %v1627_v23 = vld [vmem:[%s3104_s2 + $0x448] sm:$0xff] }
  0x51   : > { %787 = vmatmul.mubr.f32.gmra.mrb[12].mxu0 %v2815_v55  ;;  %2181 = vmatprep.subr.bf16.mxu1 %v2180_v18  ;;  %v1506_v63 = vld [vmem:[%s2431_s8 + $0x128] sm:$0xff]  ;;  %v1559_v55 = vld [vmem:[%s3104_s2 + $0x2d0] sm:$0xff]  ;;  %v2188_v42 = vpack.c.bf16 %v1627_v23, %v1626_v32  ;;  %s1639_s8 = sshll.u32 %s3112_s15, 6 }
  0x52   : > { %2119 = vmatpush3.bf16.msra.mxu0 %v2880_v43  ;;  %791 = vmatprep.mubr.f32.mxu0 %v1503_v50  ;;  %v1560_v43 = vld [vmem:[%s3104_s2 + $0x2d8] sm:$0xff]  ;;  %s3083_s5 = scalar_lea.vmem %s3106_s4, %s1639_s8 }
  0x53   : > { %2121 = vmatprep.subr.bf16.mxu0 %v2120_v31  ;;  %1135 = vmatmul.mubr.f32.gmra.mrb[20].mxu1 %v2578_v52  ;;  %v1628_v52 = vld [vmem:[%s3104_s2 + $0x450] sm:$0xff]  ;;  %v2128_v13 = vpack.c.bf16 %v1560_v43, %v1559_v55 }
  0x54   : > { %2183 = vmatpush3.bf16.msra.mxu1 %v2180_v18  ;;  %1139 = vmatprep.mubr.f32.mxu1 %v2683_v44  ;;  %v1629_v44 = vld [vmem:[%s3104_s2 + $0x458] sm:$0xff] }
  0x55   : > { %792 = vmatmul.mubr.f32.gmra.mrb[14].mxu0 %v2826_v60  ;;  %2185 = vmatprep.subr.bf16.mxu1 %v2184_v2  ;;  %v1561_v60 = vld [vmem:[%s3104_s2 + $0x2e0] sm:$0xff]  ;;  %v2192_v37 = vpack.c.bf16 %v1629_v44, %v1628_v52 }
  0x56   : > { %2123 = vmatpush3.bf16.msra.mxu0 %v2120_v31  ;;  %796 = vmatprep.mubr.f32.mxu0 %v1506_v63  ;;  %v2132_v39 = vpack.c.bf16 %v1562_v26, %v1561_v60 }
  0x57   : > { %2125 = vmatprep.subr.bf16.mxu0 %v2124_v46  ;;  %1140 = vmatmul.mubr.f32.gmra.mrb[22].mxu1 %v2595_v61  ;;  %v1630_v61 = vld [vmem:[%s3104_s2 + $0x460] sm:$0xff] }
  0x58   : > { %2187 = vmatpush3.bf16.msra.mxu1 %v2184_v2  ;;  %1144 = vmatprep.mubr.f32.mxu1 %v2720_v1  ;;  %v1631_v1 = vld [vmem:[%s3104_s2 + $0x468] sm:$0xff] }
  0x59   : > { %797 = vmatmul.mubr.f32.gmra.mrb[16].mxu0 %v2829_v62  ;;  %2189 = vmatprep.subr.bf16.mxu1 %v2188_v42  ;;  %v1563_v62 = vld [vmem:[%s3104_s2 + $0x2f0] sm:$0xff]  ;;  %v2196_v48 = vpack.c.bf16 %v1631_v1, %v1630_v61 }
  0x5a   : > { %2127 = vmatpush3.bf16.msra.mxu0 %v2124_v46  ;;  %801 = vmatprep.mubr.f32.mxu0 %v1509_v5  ;;  %v2136_v49 = vpack.c.bf16 %v1564_v41, %v1563_v62 }
  0x5b   : > { %2129 = vmatprep.subr.bf16.mxu0 %v2128_v13  ;;  %1145 = vmatmul.mubr.f32.gmra.mrb[24].mxu1 %v2632_v16  ;;  %v1632_v16 = vld [vmem:[%s3104_s2 + $0x470] sm:$0xff] }
  0x5c   : > { %2191 = vmatpush3.bf16.msra.mxu1 %v2188_v42  ;;  %1149 = vmatprep.mubr.f32.mxu1 %v2740_v15  ;;  %v1633_v15 = vld [vmem:[%s3104_s2 + $0x478] sm:$0xff] }
  0x5d   : > { %802 = vmatmul.mubr.f32.gmra.mrb[18].mxu0 %v2849_v8  ;;  %2193 = vmatprep.subr.bf16.mxu1 %v2192_v37  ;;  %v1003_v8 = vld [vmem:[%s2835_s20 + $0x8] sm:$0xff]  ;;  %v2200_v51 = vpack.c.bf16 %v1633_v15, %v1632_v16 }
  0x5e   : > { %2131 = vmatpush3.bf16.msra.mxu0 %v2128_v13  ;;  %806 = vmatprep.mubr.f32.mxu0 %v1512_v19 }
  0x5f   : > { %2133 = vmatprep.subr.bf16.mxu0 %v2132_v39  ;;  %1150 = vmatmul.mubr.f32.gmra.mrb[26].mxu1 %v2669_v36 }
  0x60   : > { %2195 = vmatpush3.bf16.msra.mxu1 %v2192_v37  ;;  %1154 = vmatprep.mubr.f32.mxu1 %v2788_v40 }
  0x61   : > { %807 = vmatmul.mubr.f32.gmra.mrb[20].mxu0 %v2856_v17  ;;  %2197 = vmatprep.subr.bf16.mxu1 %v2196_v48 }
  0x62   : > { %2135 = vmatpush3.bf16.msra.mxu0 %v2132_v39  ;;  %811 = vmatprep.mubr.f32.mxu0 %v1515_v38 }
  0x63   : > { %2137 = vmatprep.subr.bf16.mxu0 %v2136_v49  ;;  %1155 = vmatmul.mubr.f32.gmra.mrb[28].mxu1 %v2697_v53 }
  0x64   : > { %2199 = vmatpush3.bf16.msra.mxu1 %v2196_v48  ;;  %1159 = vmatprep.mubr.f32.mxu1 %v1003_v8 }
  0x65   : > { %812 = vmatmul.mubr.f32.gmra.mrb[22].mxu0 %v2864_v25  ;;  %2201 = vmatprep.subr.bf16.mxu1 %v2200_v51 }
  0x66   : > { %2139 = vmatpush3.bf16.msra.mxu0 %v2136_v49  ;;  %1956 = vmatprep.mubr.f32.mxu0 %v2874_v35 }
  0x67   : > { %1160 = vmatmul.mubr.f32.gmra.mrb[30].mxu1 %v2867_v27 }
  0x68   : > { %2203 = vmatpush3.bf16.msra.mxu1 %v2200_v51  ;;  %2000 = vmatprep.mubr.f32.mxu1 %v2906_v4 }
  0x69   : > { %1957 = vmatmul.mubr.f32.vlgmr.msra.gmra.mrb[0].mxu0 %v2883_v47 }
  0x6a   : > { %1959 = vmatprep.mubr.f32.mxu0 %v2901_v59 }
  0x6b   : > { %2001 = vmatmul.mubr.f32.vlgmr.msra.gmra.mrb[32].mxu1 %v2917_v58 }
  0x6c   : > { %2003 = vmatprep.mubr.f32.mxu1 %v2929_v6 }
  0x6d   : > { %1960 = vmatmul.mubr.f32.gmra.mrb[2].mxu0 %v2912_v28 }
  0x6e   : > { %1962 = vmatprep.mubr.f32.mxu0 %v2924_v33 }
  0x6f   : > { %2004 = vmatmul.mubr.f32.gmra.mrb[34].mxu1 %v2942_v7 }
  0x70   : > { %2006 = vmatprep.mubr.f32.mxu1 %v2961_v14 }
  0x71   : > { %1963 = vmatmul.mubr.f32.gmra.mrb[4].mxu0 %v2937_v29 }
  0x72   : > { %1965 = vmatprep.mubr.f32.mxu0 %v2956_v10 }
  0x73   : > { %2007 = vmatmul.mubr.f32.gmra.mrb[36].mxu1 %v2972_v24 }
  0x74   : > { %2009 = vmatprep.mubr.f32.mxu1 %v2984_v34 }
  0x75   : > { %1966 = vmatmul.mubr.f32.gmra.mrb[6].mxu0 %v2967_v20 }
  0x77   : > { %2010 = vmatmul.mubr.f32.gmra.mrb[38].mxu1 %v2890_v21 }
  0xfd   : > { %v1696_v36 = vpop.f32.mrb[0].mxu1 }
  0xfe   : > { %v1697_v53 = vpop.f32.mrb[1].mxu1 }
  0xff   : > { %v1698_v40 = vadd.f32 %v1697_v53, %v1696_v36 }
 0x101   : > { %v1699_v17 = vpop.f32.mrb[2].mxu1 }
 0x102   : > { %v1700_v25 = vpop.f32.mrb[3].mxu1 }
 0x103   : > { %v1701_v27 = vadd.f32 %v1700_v25, %v1699_v17 }
 0x105   : > { %v1702_v35 = vpop.f32.mrb[4].mxu1 }
 0x106   : > { %v1703_v47 = vpop.f32.mrb[5].mxu1 }
 0x107   : > { %v1704_v59 = vadd.f32 %v1703_v47, %v1702_v35 }
 0x109   : > { %v1705_v4 = vpop.f32.mrb[6].mxu1 }
 0x10a   : > { %v1706_v28 = vpop.f32.mrb[7].mxu1 }
 0x10b   : > { %v1707_v58 = vadd.f32 %v1706_v28, %v1705_v4 }
 0x10d   : > { %v1708_v33 = vpop.f32.mrb[8].mxu1 }
 0x10e   : > { %v1709_v6 = vpop.f32.mrb[9].mxu1 }
 0x10f   : > { %v1710_v12 = vadd.f32 %v1709_v6, %v1708_v33 }
 0x111   : > { %v1711_v29 = vpop.f32.mrb[10].mxu1 }
 0x112   : > { %v1712_v7 = vpop.f32.mrb[11].mxu1 }
 0x113   : > { %v1713_v54 = vadd.f32 %v1712_v7, %v1711_v29 }
 0x115   : > { %v1714_v56 = vpop.f32.mrb[12].mxu1 }
 0x116   : > { %v1715_v21 = vpop.f32.mrb[13].mxu1 }
 0x117   : > { %v1716_v9 = vadd.f32 %v1715_v21, %v1714_v56 }
 0x119   : > { %v1717_v11 = vpop.f32.mrb[14].mxu1 }
 0x11a   : > { %v1718_v22 = vpop.f32.mrb[15].mxu1 }
 0x11b   : > { %v1719_v10 = vadd.f32 %v1718_v22, %v1717_v11 }
 0x11c   : > { %v1752_v14 = vpop.f32.mrb[8].mxu0 }
 0x11d   : > { %v1753_v3 = vpop.f32.mrb[9].mxu0 }
 0x11e   : > { %v1754_v18 = vadd.f32 %v1753_v3, %v1752_v14  ;;  %v1832_v20 = vpop.f32.mrb[16].mxu1 }
 0x11f   : > { %v1833_v24 = vpop.f32.mrb[17].mxu1 }
 0x120   : > { %v1755_v30 = vpop.f32.mrb[10].mxu0  ;;  %v1834_v45 = vadd.f32 %v1833_v24, %v1832_v20  ;;  %v2208_v34 = vadd.f32 %v1754_v18, %v1698_v40  ;;  %v1634_v18 = vld [vmem:[%s3105_s3] ss:$0 sm:$0xff] }
 0x121   : > { %v1756_v50 = vpop.f32.mrb[11].mxu0 }
 0x122   : > { %v1757_v31 = vadd.f32 %v1756_v50, %v1755_v30  ;;  %v1835_v0 = vpop.f32.mrb[18].mxu1 }
 0x123   : > { %v1836_v57 = vpop.f32.mrb[19].mxu1 }
 0x124   : > { %v1758_v2 = vpop.f32.mrb[12].mxu0  ;;  %v1837_v32 = vadd.f32 %v1836_v57, %v1835_v0  ;;  %v2204_v23 = vadd.f32 %v1757_v31, %v1701_v27 }
 0x125   : > { %v1759_v63 = vpop.f32.mrb[13].mxu0 }
 0x126   : > { %v1760_v46 = vadd.f32 %v1759_v63, %v1758_v2  ;;  %v1838_v55 = vpop.f32.mrb[20].mxu1 }
 0x127   : > { %v1839_v43 = vpop.f32.mrb[21].mxu1 }
 0x128   : > { %v1761_v42 = vpop.f32.mrb[14].mxu0  ;;  %v1840_v52 = vadd.f32 %v1839_v43, %v1838_v55  ;;  %v2216_v44 = vadd.f32 %v1760_v46, %v1704_v59 }
 0x129   : > { %v1762_v5 = vpop.f32.mrb[15].mxu0 }
 0x12a   : > { %v1763_v13 = vadd.f32 %v1762_v5, %v1761_v42  ;;  %v1841_v60 = vpop.f32.mrb[22].mxu1 }
 0x12b   : > { %v1842_v26 = vpop.f32.mrb[23].mxu1 }
 0x12c   : > { %v1764_v37 = vpop.f32.mrb[16].mxu0  ;;  %v1843_v61 = vadd.f32 %v1842_v26, %v1841_v60  ;;  %v2212_v1 = vadd.f32 %v1763_v13, %v1707_v58 }
 0x12d   : > { %v1765_v19 = vpop.f32.mrb[17].mxu0 }
 0x12e   : > { %v1766_v39 = vadd.f32 %v1765_v19, %v1764_v37  ;;  %v1844_v62 = vpop.f32.mrb[24].mxu1 }
 0x12f   : > { %v1845_v41 = vpop.f32.mrb[25].mxu1 }
 0x130   : > { %v1767_v48 = vpop.f32.mrb[18].mxu0  ;;  %v1846_v16 = vadd.f32 %v1845_v41, %v1844_v62  ;;  %v2224_v15 = vadd.f32 %v1766_v39, %v1710_v12 }
 0x131   : > { %v1768_v38 = vpop.f32.mrb[19].mxu0 }
 0x132   : > { %v1769_v49 = vadd.f32 %v1768_v38, %v1767_v48  ;;  %v1847_v8 = vpop.f32.mrb[26].mxu1 }
 0x133   : > { %v1848_v51 = vpop.f32.mrb[27].mxu1 }
 0x134   : > { %v1770_v36 = vpop.f32.mrb[20].mxu0  ;;  %v1849_v53 = vadd.f32 %v1848_v51, %v1847_v8  ;;  %v2220_v40 = vadd.f32 %v1769_v49, %v1713_v54 }
 0x135   : > { %v1771_v17 = vpop.f32.mrb[21].mxu0 }
 0x136   : > { %v1772_v25 = vadd.f32 %v1771_v17, %v1770_v36  ;;  %v1850_v27 = vpop.f32.mrb[28].mxu1 }
 0x137   : > { %v1851_v35 = vpop.f32.mrb[29].mxu1 }
 0x138   : > { %v1773_v47 = vpop.f32.mrb[22].mxu0  ;;  %v1852_v59 = vadd.f32 %v1851_v35, %v1850_v27  ;;  %v2232_v4 = vadd.f32 %v1772_v25, %v1716_v9 }
 0x139   : > { %v1774_v28 = vpop.f32.mrb[23].mxu0 }
 0x13a   : > { %v1775_v58 = vadd.f32 %v1774_v28, %v1773_v47  ;;  %v1853_v33 = vpop.f32.mrb[30].mxu1 }
 0x13b   : > { %v1854_v6 = vpop.f32.mrb[31].mxu1 }
 0x13c   : > { %v1958_v12 = vpop.f32.mrb[0].mxu0  ;;  %v1855_v29 = vadd.f32 %v1854_v6, %v1853_v33  ;;  %v2228_v7 = vadd.f32 %v1775_v58, %v1719_v10 }
 0x13d   : > { %v2205_v56 = vadd.f32 %v2204_v23, %v1958_v12  ;;  %v955_v21 = vpop.f32.mrb[1].mxu0 }
 0x13e   : > { %v2209_v11 = vadd.f32 %v2208_v34, %v955_v21  ;;  %v2002_v22 = vpop.f32.mrb[32].mxu1 }
 0x13f   : > { %v2206_v54 = vadd.f32 %v2205_v56, %v1837_v32  ;;  %v1303_v14 = vpop.f32.mrb[33].mxu1 }
 0x140   : > { %v1961_v3 = vpop.f32.mrb[2].mxu0  ;;  %v2210_v9 = vadd.f32 %v2209_v11, %v1834_v45 }
 0x141   : > { %v2213_v20 = vadd.f32 %v2212_v1, %v1961_v3  ;;  %v2207_v24 = vadd.f32 %v2206_v54, %v2002_v22  ;;  %v965_v30 = vpop.f32.mrb[3].mxu0 }
 0x142   : > { %v2217_v10 = vadd.f32 %v2216_v44, %v965_v30  ;;  %v2211_v34 = vadd.f32 %v2210_v9, %v1303_v14  ;;  %v2005_v50 = vpop.f32.mrb[34].mxu1 }
 0x143   : > { %v1358_v31 = vadd.f32 %v2207_v24, %v1634_v18  ;;  %v2214_v0 = vadd.f32 %v2213_v20, %v1843_v61  ;;  %v1313_v57 = vpop.f32.mrb[35].mxu1 }
 0x144   : > { %v1357_v2 = vadd.f32 %v2211_v34, %v1634_v18  ;;  %v1964_v32 = vpop.f32.mrb[4].mxu0  ;;  %v2218_v45 = vadd.f32 %v2217_v10, %v1840_v52 }
 0x145   : > { %1366 = vst [vmem:[%s3083_s5 + $0x8] sm:$0xff] %v1358_v31  ;;  %v2221_v23 = vadd.f32 %v2220_v40, %v1964_v32  ;;  %v2215_v63 = vadd.f32 %v2214_v0, %v2005_v50  ;;  %v975_v46 = vpop.f32.mrb[5].mxu0 }
 0x146   : > { %1365 = vst [vmem:[%s3083_s5] sm:$0xff] %v1357_v2  ;;  %v2225_v55 = vadd.f32 %v2224_v15, %v975_v46  ;;  %v2219_v43 = vadd.f32 %v2218_v45, %v1313_v57  ;;  %v2008_v42 = vpop.f32.mrb[36].mxu1 }
 0x147   : > { %v1360_v5 = vadd.f32 %v2215_v63, %v1634_v18  ;;  %v2222_v44 = vadd.f32 %v2221_v23, %v1849_v53  ;;  %v1323_v13 = vpop.f32.mrb[37].mxu1 }
 0x148   : > { %v1359_v60 = vadd.f32 %v2219_v43, %v1634_v18  ;;  %v1967_v26 = vpop.f32.mrb[6].mxu0  ;;  %v2226_v37 = vadd.f32 %v2225_v55, %v1846_v16 }
 0x149   : > { %1368 = vst [vmem:[%s3083_s5 + $0x18] sm:$0xff] %v1360_v5  ;;  %v2229_v61 = vadd.f32 %v2228_v7, %v1967_v26  ;;  %v2223_v52 = vadd.f32 %v2222_v44, %v2008_v42  ;;  %v985_v1 = vpop.f32.mrb[7].mxu0 }
 0x14a   : > { %1367 = vst [vmem:[%s3083_s5 + $0x10] sm:$0xff] %v1359_v60  ;;  %v2233_v19 = vadd.f32 %v2232_v4, %v985_v1  ;;  %v2227_v39 = vadd.f32 %v2226_v37, %v1323_v13  ;;  %v2011_v62 = vpop.f32.mrb[38].mxu1 }
 0x14b   : > { %v1362_v41 = vadd.f32 %v2223_v52, %v1634_v18  ;;  %v2230_v48 = vadd.f32 %v2229_v61, %v1855_v29  ;;  %v1333_v15 = vpop.f32.mrb[39].mxu1 }
 0x14c   : > { %v1361_v38 = vadd.f32 %v2227_v39, %v1634_v18  ;;  %v2234_v49 = vadd.f32 %v2233_v19, %v1852_v59 }
 0x14d   : > { %1370 = vst [vmem:[%s3083_s5 + $0x28] sm:$0xff] %v1362_v41  ;;  %v2231_v8 = vadd.f32 %v2230_v48, %v2011_v62 }
 0x14e   : > { %1369 = vst [vmem:[%s3083_s5 + $0x20] sm:$0xff] %v1361_v38  ;;  %v2235_v16 = vadd.f32 %v2234_v49, %v1333_v15 }
 0x14f   : > { %v1364_v51 = vadd.f32 %v2231_v8, %v1634_v18 }
 0x150   : > { %v1363_v36 = vadd.f32 %v2235_v16, %v1634_v18 }
 0x151   : > { %1372 = vst [vmem:[%s3083_s5 + $0x38] sm:$0xff] %v1364_v51 }
 0x152   : > { %1371 = vst [vmem:[%s3083_s5 + $0x30] sm:$0xff] %v1363_v36 }
 0x153 PF: > { %s14_s17 = sadd.s32 1, %s2293_s17   ;;  %s3107_s15 = smov %s2289_s16 }
 0x154   : > { %p11_p5 = scmp.ge.s32.totalorder %s14_s17, 4   ;;  %s3108_s16 = smov %s3110_s18 }
 0x156   :  { %13 = sbr.rel (!%p11_p5) target bundleno = 2 (0x2), region = 73 }

</bundles_post_ra>
